<compile_context>
chip_gen: v5e
topology: v5e:2x2
jax: 0.10.0
libtpu: 0.0.40
codegen_flags: <defaults>
</compile_context>

<pallas_src>
import functools
import math

import jax
import jax.numpy as jnp
import numpy as np
from jax.experimental import pallas as pl
from jax.experimental.pallas import tpu as pltpu


def _round_up(x, m):
    return ((x + m - 1) // m) * m


def _cdiv(a, b):
    return (a + b - 1) // b


# ---------------------------------------------------------------------------
# Kernel body: one (tr, tn) VMEM block.
# ---------------------------------------------------------------------------

def _kaf_block_kernel(alpha_ref, x_ref, o_ref, *, alpha_axis, factorized,
                      sqrt_gamma, dict_scaled, center_s, two_delta_s, m):
    """y = sum_d exp(-(x_s - d_s[k])^2) * alpha[k], x_s = x * sqrt(gamma).

    alpha_ref: VMEM (tr, D)  if alpha_axis == 0 (per-row / per-channel)
               VMEM (D, tn)  if alpha_axis == 1 (per-lane / per-feature)
    x_ref    : VMEM (tr, tn)
    o_ref    : VMEM (tr, tn)
    """
    def a(k):
        if alpha_axis == 0:
            return alpha_ref[:, k:k + 1]     # (tr, 1): sublane-varying
        return alpha_ref[k:k + 1, :]         # (1, tn): lane-varying

    x = x_ref[...].astype(jnp.float32) * sqrt_gamma   # prescale once per block

    if factorized:
        D = len(dict_scaled)
        v = x - center_s
        base = jnp.exp(-(v * v))              # EUP
        step_up = jnp.exp(two_delta_s * v)    # EUP
        step_dn = jnp.exp(-two_delta_s * v)   # EUP
        acc = base * a(m)
        cur = base
        for j in range(1, D - m):             # dict points above the center
            cur = cur * step_up
            acc = acc + cur * a(m + j)
        cur = base
        for j in range(1, m + 1):             # dict points below the center
            cur = cur * step_dn
            acc = acc + cur * a(m - j)
    else:
        acc = jnp.zeros_like(x)
        for k, dv in enumerate(dict_scaled):  # D fully unrolled, dv is a const
            diff = x - dv
            acc = acc + jnp.exp(-(diff * diff)) * a(k)

    o_ref[...] = acc.astype(o_ref.dtype)


# ---------------------------------------------------------------------------
# Tiling helpers (all compile-time Python ints)
# ---------------------------------------------------------------------------

_TARGET_ELEMS = 262144   # ~1 MB f32 per block: big enough to hide per-step
_MAX_TN = 2048           # overhead, small enough for v5e's 16 MiB scoped VMEM
_MAX_TR = 1024           # and v7x's 64 MiB physical VMEM.


def _choose_tn(cols):
    """Lane tile: multiple of 128, minimizing total padded width (no 2x blow-up)."""
    cols_pad = _round_up(cols, 128)
    if cols_pad <= _MAX_TN:
        return cols_pad
    best_tn, best_total = 128, None
    tn = 128
    while tn <= _MAX_TN:
        total = _cdiv(cols, tn) * tn
        if best_total is None or total < best_total or (total == best_total and tn > best_tn):
            best_tn, best_total = tn, total
        tn += 128
    return best_tn


def _tr_cap(tn):
    cap = (_TARGET_ELEMS // tn) // 8 * 8
    return max(8, min(_MAX_TR, cap))


def _choose_tr(rows, tr_cap, step=8):
    """Row tile: multiple of `step`, <= tr_cap, minimizing total padded rows."""
    bound = max(step, min(tr_cap, _round_up(rows, step)))
    best_tr, best_total = step, None
    tr = step
    while tr <= bound:
        total = _cdiv(rows, tr) * tr
        if best_total is None or total < best_total or (total == best_total and tr > best_tr):
            best_tr, best_total = tr, total
        tr += step
    return best_tr


def _plan_conv_alpha(B, C, tr_cap, rows, alpha_cd):
    """Pick row tile + alpha table/index_map for the conv case without
    materializing a (B*C, D) per-row alpha array when avoidable."""
    L = (8 * C) // math.gcd(8, C)            # lcm(8, C)
    if L <= tr_cap:
        # tr is a multiple of C: one tiny (tr, D) channel-periodic table,
        # constant block index -> stays resident in VMEM.
        tr = _choose_tr(rows, tr_cap, step=L)
        alpha_tab = jnp.tile(alpha_cd, (tr // C, 1))        # (tr, D)
        return tr, alpha_tab, (lambda i, j: (0, 0))
    if C % 8 == 0:
        # tr divides C: index the original (C, D) table modularly.
        divs = [d for d in range(8, min(C, tr_cap) + 1, 8) if C % d == 0]
        if divs:
            tr = max(divs)
            n_blk = C // tr
            return tr, alpha_cd, (lambda i, j, _n=n_blk: (i % _n, 0))
    # Fallback: per-row alpha (B*C, D). Small HBM cost, always correct.
    tr = _choose_tr(rows, tr_cap, step=8)
    alpha_tab = jnp.tile(alpha_cd, (B, 1))
    return tr, alpha_tab, (lambda i, j: (i, 0))


# ---------------------------------------------------------------------------
# Tiled driver
# ---------------------------------------------------------------------------

def _run_kaf_2d(x2d, alpha_tab, alpha_block, alpha_index_map, alpha_axis, tr, tn,
                *, factorized, sqrt_gamma, dict_scaled, center_s, two_delta_s, m):
    rows, cols = x2d.shape
    D = len(dict_scaled)
    grid = (_cdiv(rows, tr), _cdiv(cols, tn))

    kern = functools.partial(
        _kaf_block_kernel, alpha_axis=alpha_axis, factorized=factorized,
        sqrt_gamma=sqrt_gamma, dict_scaled=dict_scaled,
        center_s=center_s, two_delta_s=two_delta_s, m=m)

    elems = rows * cols
    itemsize = jnp.dtype(x2d.dtype).itemsize
    if factorized:
        cost = pl.CostEstimate(flops=elems * (3 * D + 10),
                               transcendentals=3 * elems,
                               bytes_accessed=2 * elems * itemsize)
    else:
        cost = pl.CostEstimate(flops=elems * 5 * D,
                               transcendentals=elems * D,
                               bytes_accessed=2 * elems * itemsize)

    return pl.pallas_call(
        kern,
        out_shape=jax.ShapeDtypeStruct((rows, cols), x2d.dtype),
        grid=grid,
        in_specs=[
            pl.BlockSpec(alpha_block, alpha_index_map),     # small alpha table
            pl.BlockSpec((tr, tn), lambda i, j: (i, j)),    # x
        ],
        out_specs=pl.BlockSpec((tr, tn), lambda i, j: (i, j)),
        compiler_params=pltpu.CompilerParams(
            dimension_semantics=("parallel", "parallel"),
            vmem_limit_bytes=32 * 1024 * 1024),
        cost_estimate=cost,
    )(alpha_tab, x2d)


# ---------------------------------------------------------------------------
# Public forward
# ---------------------------------------------------------------------------

def kaf_forward(x, alpha, dict_vals, gamma, conv=True, use_factorized=True):
    """KAF forward (gaussian kernel).

    conv=True : x is NCHW (B, C, H, W), alpha is (1, C, 1, 1, D) (or (C, D)).
    conv=False: x is (B, F),            alpha is (1, F, D)       (or (F, D)).

    dict_vals / gamma are fixed module buffers -> baked as compile-time consts.
    """
    dict_np = np.asarray(dict_vals, dtype=np.float64).reshape(-1)
    D = int(dict_np.shape[0])
    gamma_f = float(np.asarray(gamma, dtype=np.float64).reshape(-1)[0])
    sqrt_gamma = float(np.sqrt(gamma_f))
    dict_s = dict_np * sqrt_gamma
    dict_scaled = tuple(float(v) for v in dict_s)

    # Uniform-grid factorization parameters (valid for the module's linspace dict).
    m = D // 2
    center_s = float(dict_s[m])
    delta_s = float((dict_s[-1] - dict_s[0]) / (D - 1)) if D >= 2 else 0.0
    two_delta_s = 2.0 * delta_s
    uniform = (D >= 2 and np.allclose(np.diff(dict_s), delta_s,
                                      rtol=1e-4, atol=1e-6 * (abs(delta_s) + 1.0)))
    amp_ok = (max(m, D - 1 - m) * abs(delta_s)) ** 2 <= 60.0   # no f32 overflow
    factorized = bool(use_factorized and uniform and amp_ok and D >= 2)

    if factorized:
        offs = (np.arange(D) - m) * delta_s
        c_vec = jnp.asarray(np.exp(-(offs ** 2)).astype(np.float32))   # folded into alpha

    common = dict(factorized=factorized, sqrt_gamma=sqrt_gamma,
                  dict_scaled=dict_scaled, center_s=center_s,
                  two_delta_s=two_delta_s, m=m)

    if conv:
        B, C, H, W = x.shape
        alpha_cd = jnp.asarray(alpha).reshape(C, D).astype(jnp.float32)
        if factorized:
            alpha_cd = alpha_cd * c_vec[None, :]
        rows, cols = B * C, H * W
        x2d = x.reshape(rows, cols)                  # zero-copy reshape
        tn = _choose_tn(cols)
        tr, alpha_tab, alpha_index_map = _plan_conv_alpha(B, C, _tr_cap(tn), rows, alpha_cd)
        out = _run_kaf_2d(x2d, alpha_tab, (tr, D), alpha_index_map, 0, tr, tn, **common)
        return out.reshape(B, C, H, W)               # zero-copy reshape
    else:
        Bn, F = x.shape
        alpha_fd = jnp.asarray(alpha).reshape(F, D).astype(jnp.float32)
        if factorized:
            alpha_fd = alpha_fd * c_vec[None, :]
        alpha_dt = alpha_fd.T                        # (D, F), tiny
        tn = _choose_tn(F)
        tr = _choose_tr(Bn, _tr_cap(tn), step=8)
        # TODO(synk): for tiny dense batches (rows < 8) sublanes are under-used;
        # folding the feature axis into rows is not implemented.
        return _run_kaf_2d(x, alpha_dt, (D, tn), (lambda i, j: (0, j)), 1, tr, tn, **common)


def kaf_reference(x, alpha, dict_vals, gamma, conv=True):
    """Pure-JAX reference matching the PyTorch semantics exactly."""
    dict_vals = jnp.asarray(dict_vals, dtype=jnp.float32).reshape(-1)
    D = dict_vals.shape[0]
    if conv:
        k = jnp.exp(-gamma * (x[..., None] - dict_vals.reshape(1, 1, 1, 1, D)) ** 2)
        return jnp.sum(k * alpha, axis=4)
    else:
        k = jnp.exp(-gamma * (x[..., None] - dict_vals.reshape(1, 1, D)) ** 2)
        return jnp.sum(k * alpha, axis=2)


if __name__ == "__main__":
    # Module hyper-parameters (kernel='gaussian').
    B, C, H, W = 2, 4, 16, 16
    D = 20
    boundary = 4.0

    # Buffers (deterministic, matching KAF.__init__):
    dict_np = np.linspace(-boundary, boundary, D).astype(np.float32)
    interval = float(dict_np[1] - dict_np[0])
    sigma = 2.0 * interval
    gamma_init = float(0.5 / np.square(sigma))
    dict_vals = jnp.asarray(dict_np)

    key = jax.random.PRNGKey(0)
    k_alpha, k_x, k_alpha_d, k_x_d = jax.random.split(key, 4)

    # ---- conv=True: NCHW input, alpha ~ Normal(0, 0.8) of shape (1,C,1,1,D)
    alpha = 0.8 * jax.random.normal(k_alpha, (1, C, 1, 1, D), dtype=jnp.float32)
    x = jax.random.normal(k_x, (B, C, H, W), dtype=jnp.float32)

    y = jax.block_until_ready(kaf_forward(x, alpha, dict_vals, gamma_init, conv=True))
    y_ref = kaf_reference(x, alpha, dict_vals, gamma_init, conv=True)
    # Factorized path trades ~1e-5-level absolute error for ~7x fewer EUP exps.
    np.testing.assert_allclose(np.asarray(y), np.asarray(y_ref), rtol=1e-4, atol=1e-4)
    assert y.shape == (B, C, H, W) and y.dtype == x.dtype

    # Direct (non-factorized) path: bitwise-close to the reference.
    y_exact = jax.block_until_ready(
        kaf_forward(x, alpha, dict_vals, gamma_init, conv=True, use_factorized=False))
    np.testing.assert_allclose(np.asarray(y_exact), np.asarray(y_ref), rtol=1e-5, atol=1e-5)

    # ---- conv=False (dense): (B, F) input, alpha of shape (1, F, D)
    Bd, F = 8, 32
    alpha_d = 0.8 * jax.random.normal(k_alpha_d, (1, F, D), dtype=jnp.float32)
    x_d = jax.random.normal(k_x_d, (Bd, F), dtype=jnp.float32)

    y_d = jax.block_until_ready(kaf_forward(x_d, alpha_d, dict_vals, gamma_init, conv=False))
    y_d_ref = kaf_reference(x_d, alpha_d, dict_vals, gamma_init, conv=False)
    np.testing.assert_allclose(np.asarray(y_d), np.asarray(y_d_ref), rtol=1e-4, atol=1e-4)
    assert y_d.shape == (Bd, F) and y_d.dtype == x_d.dtype

    print("KERNEL_OK")
</pallas_src>

<mosaic_0001>
module attributes {stable_mosaic.version = 11 : i64} {
  func.func @_kaf_block_kernel(%arg0: i32, %arg1: i32, %arg2: memref<8x20xf32, #tpu.memory_space<vmem>>, %arg3: memref<8x256xf32, #tpu.memory_space<vmem>>, %arg4: memref<8x256xf32, #tpu.memory_space<vmem>>) attributes {dimension_semantics = [#tpu.dimension_semantics<parallel>, #tpu.dimension_semantics<parallel>], iteration_bounds = array<i64: 1, 1>, scalar_prefetch = 0 : i64, scratch_operands = 0 : i64, tpu.core_type = #tpu.core_type<tc>, window_params = [{pipeline_mode = #tpu.pipeline_mode<synchronous>, transform_indices = @transform_0, window_bounds = array<i64: 8, 20>}, {transform_indices = @transform_1, window_bounds = array<i64: 8, 256>}, {transform_indices = @transform_2, window_bounds = array<i64: 8, 256>}]} {
    %c0 = arith.constant 0 : index
    %c0_0 = arith.constant 0 : index
    %0 = vector.load %arg3[%c0, %c0_0] : memref<8x256xf32, #tpu.memory_space<vmem>>, vector<8x256xf32>
    %cst = arith.constant 0.839689195 : f32
    %1 = vector.broadcast %cst : f32 to vector<8x256xf32>
    %2 = arith.mulf %0, %1 : vector<8x256xf32>
    %cst_1 = arith.constant 0.176776677 : f32
    %3 = vector.broadcast %cst_1 : f32 to vector<8x256xf32>
    %4 = arith.subf %2, %3 : vector<8x256xf32>
    %5 = arith.mulf %4, %4 : vector<8x256xf32>
    %cst_2 = arith.constant 0.000000e+00 : f32
    %6 = vector.broadcast %cst_2 : f32 to vector<8x256xf32>
    %7 = arith.subf %6, %5 : vector<8x256xf32>
    %8 = math.exp %7 : vector<8x256xf32>
    %cst_3 = arith.constant 0.707106649 : f32
    %9 = vector.broadcast %cst_3 : f32 to vector<8x256xf32>
    %10 = arith.mulf %9, %4 : vector<8x256xf32>
    %11 = math.exp %10 : vector<8x256xf32>
    %cst_4 = arith.constant -0.707106649 : f32
    %12 = vector.broadcast %cst_4 : f32 to vector<8x256xf32>
    %13 = arith.mulf %12, %4 : vector<8x256xf32>
    %14 = math.exp %13 : vector<8x256xf32>
    %c0_5 = arith.constant 0 : index
    %c10 = arith.constant 10 : index
    %15 = vector.load %arg2[%c0_5, %c10] : memref<8x20xf32, #tpu.memory_space<vmem>>, vector<8x1xf32>
    %16 = vector.broadcast %15 : vector<8x1xf32> to vector<8x256xf32>
    %17 = arith.mulf %8, %16 : vector<8x256xf32>
    %18 = arith.mulf %8, %11 : vector<8x256xf32>
    %c0_6 = arith.constant 0 : index
    %c11 = arith.constant 11 : index
    %19 = vector.load %arg2[%c0_6, %c11] : memref<8x20xf32, #tpu.memory_space<vmem>>, vector<8x1xf32>
    %20 = vector.broadcast %19 : vector<8x1xf32> to vector<8x256xf32>
    %21 = arith.mulf %18, %20 : vector<8x256xf32>
    %22 = arith.addf %17, %21 : vector<8x256xf32>
    %23 = arith.mulf %18, %11 : vector<8x256xf32>
    %c0_7 = arith.constant 0 : index
    %c12 = arith.constant 12 : index
    %24 = vector.load %arg2[%c0_7, %c12] : memref<8x20xf32, #tpu.memory_space<vmem>>, vector<8x1xf32>
    %25 = vector.broadcast %24 : vector<8x1xf32> to vector<8x256xf32>
    %26 = arith.mulf %23, %25 : vector<8x256xf32>
    %27 = arith.addf %22, %26 : vector<8x256xf32>
    %28 = arith.mulf %23, %11 : vector<8x256xf32>
    %c0_8 = arith.constant 0 : index
    %c13 = arith.constant 13 : index
    %29 = vector.load %arg2[%c0_8, %c13] : memref<8x20xf32, #tpu.memory_space<vmem>>, vector<8x1xf32>
    %30 = vector.broadcast %29 : vector<8x1xf32> to vector<8x256xf32>
    %31 = arith.mulf %28, %30 : vector<8x256xf32>
    %32 = arith.addf %27, %31 : vector<8x256xf32>
    %33 = arith.mulf %28, %11 : vector<8x256xf32>
    %c0_9 = arith.constant 0 : index
    %c14 = arith.constant 14 : index
    %34 = vector.load %arg2[%c0_9, %c14] : memref<8x20xf32, #tpu.memory_space<vmem>>, vector<8x1xf32>
    %35 = vector.broadcast %34 : vector<8x1xf32> to vector<8x256xf32>
    %36 = arith.mulf %33, %35 : vector<8x256xf32>
    %37 = arith.addf %32, %36 : vector<8x256xf32>
    %38 = arith.mulf %33, %11 : vector<8x256xf32>
    %c0_10 = arith.constant 0 : index
    %c15 = arith.constant 15 : index
    %39 = vector.load %arg2[%c0_10, %c15] : memref<8x20xf32, #tpu.memory_space<vmem>>, vector<8x1xf32>
    %40 = vector.broadcast %39 : vector<8x1xf32> to vector<8x256xf32>
    %41 = arith.mulf %38, %40 : vector<8x256xf32>
    %42 = arith.addf %37, %41 : vector<8x256xf32>
    %43 = arith.mulf %38, %11 : vector<8x256xf32>
    %c0_11 = arith.constant 0 : index
    %c16 = arith.constant 16 : index
    %44 = vector.load %arg2[%c0_11, %c16] : memref<8x20xf32, #tpu.memory_space<vmem>>, vector<8x1xf32>
    %45 = vector.broadcast %44 : vector<8x1xf32> to vector<8x256xf32>
    %46 = arith.mulf %43, %45 : vector<8x256xf32>
    %47 = arith.addf %42, %46 : vector<8x256xf32>
    %48 = arith.mulf %43, %11 : vector<8x256xf32>
    %c0_12 = arith.constant 0 : index
    %c17 = arith.constant 17 : index
    %49 = vector.load %arg2[%c0_12, %c17] : memref<8x20xf32, #tpu.memory_space<vmem>>, vector<8x1xf32>
    %50 = vector.broadcast %49 : vector<8x1xf32> to vector<8x256xf32>
    %51 = arith.mulf %48, %50 : vector<8x256xf32>
    %52 = arith.addf %47, %51 : vector<8x256xf32>
    %53 = arith.mulf %48, %11 : vector<8x256xf32>
    %c0_13 = arith.constant 0 : index
    %c18 = arith.constant 18 : index
    %54 = vector.load %arg2[%c0_13, %c18] : memref<8x20xf32, #tpu.memory_space<vmem>>, vector<8x1xf32>
    %55 = vector.broadcast %54 : vector<8x1xf32> to vector<8x256xf32>
    %56 = arith.mulf %53, %55 : vector<8x256xf32>
    %57 = arith.addf %52, %56 : vector<8x256xf32>
    %58 = arith.mulf %53, %11 : vector<8x256xf32>
    %c0_14 = arith.constant 0 : index
    %c19 = arith.constant 19 : index
    %59 = vector.load %arg2[%c0_14, %c19] : memref<8x20xf32, #tpu.memory_space<vmem>>, vector<8x1xf32>
    %60 = vector.broadcast %59 : vector<8x1xf32> to vector<8x256xf32>
    %61 = arith.mulf %58, %60 : vector<8x256xf32>
    %62 = arith.addf %57, %61 : vector<8x256xf32>
    %63 = arith.mulf %8, %14 : vector<8x256xf32>
    %c0_15 = arith.constant 0 : index
    %c9 = arith.constant 9 : index
    %64 = vector.load %arg2[%c0_15, %c9] : memref<8x20xf32, #tpu.memory_space<vmem>>, vector<8x1xf32>
    %65 = vector.broadcast %64 : vector<8x1xf32> to vector<8x256xf32>
    %66 = arith.mulf %63, %65 : vector<8x256xf32>
    %67 = arith.addf %62, %66 : vector<8x256xf32>
    %68 = arith.mulf %63, %14 : vector<8x256xf32>
    %c0_16 = arith.constant 0 : index
    %c8 = arith.constant 8 : index
    %69 = vector.load %arg2[%c0_16, %c8] : memref<8x20xf32, #tpu.memory_space<vmem>>, vector<8x1xf32>
    %70 = vector.broadcast %69 : vector<8x1xf32> to vector<8x256xf32>
    %71 = arith.mulf %68, %70 : vector<8x256xf32>
    %72 = arith.addf %67, %71 : vector<8x256xf32>
    %73 = arith.mulf %68, %14 : vector<8x256xf32>
    %c0_17 = arith.constant 0 : index
    %c7 = arith.constant 7 : index
    %74 = vector.load %arg2[%c0_17, %c7] : memref<8x20xf32, #tpu.memory_space<vmem>>, vector<8x1xf32>
    %75 = vector.broadcast %74 : vector<8x1xf32> to vector<8x256xf32>
    %76 = arith.mulf %73, %75 : vector<8x256xf32>
    %77 = arith.addf %72, %76 : vector<8x256xf32>
    %78 = arith.mulf %73, %14 : vector<8x256xf32>
    %c0_18 = arith.constant 0 : index
    %c6 = arith.constant 6 : index
    %79 = vector.load %arg2[%c0_18, %c6] : memref<8x20xf32, #tpu.memory_space<vmem>>, vector<8x1xf32>
    %80 = vector.broadcast %79 : vector<8x1xf32> to vector<8x256xf32>
    %81 = arith.mulf %78, %80 : vector<8x256xf32>
    %82 = arith.addf %77, %81 : vector<8x256xf32>
    %83 = arith.mulf %78, %14 : vector<8x256xf32>
    %c0_19 = arith.constant 0 : index
    %c5 = arith.constant 5 : index
    %84 = vector.load %arg2[%c0_19, %c5] : memref<8x20xf32, #tpu.memory_space<vmem>>, vector<8x1xf32>
    %85 = vector.broadcast %84 : vector<8x1xf32> to vector<8x256xf32>
    %86 = arith.mulf %83, %85 : vector<8x256xf32>
    %87 = arith.addf %82, %86 : vector<8x256xf32>
    %88 = arith.mulf %83, %14 : vector<8x256xf32>
    %c0_20 = arith.constant 0 : index
    %c4 = arith.constant 4 : index
    %89 = vector.load %arg2[%c0_20, %c4] : memref<8x20xf32, #tpu.memory_space<vmem>>, vector<8x1xf32>
    %90 = vector.broadcast %89 : vector<8x1xf32> to vector<8x256xf32>
    %91 = arith.mulf %88, %90 : vector<8x256xf32>
    %92 = arith.addf %87, %91 : vector<8x256xf32>
    %93 = arith.mulf %88, %14 : vector<8x256xf32>
    %c0_21 = arith.constant 0 : index
    %c3 = arith.constant 3 : index
    %94 = vector.load %arg2[%c0_21, %c3] : memref<8x20xf32, #tpu.memory_space<vmem>>, vector<8x1xf32>
    %95 = vector.broadcast %94 : vector<8x1xf32> to vector<8x256xf32>
    %96 = arith.mulf %93, %95 : vector<8x256xf32>
    %97 = arith.addf %92, %96 : vector<8x256xf32>
    %98 = arith.mulf %93, %14 : vector<8x256xf32>
    %c0_22 = arith.constant 0 : index
    %c2 = arith.constant 2 : index
    %99 = vector.load %arg2[%c0_22, %c2] : memref<8x20xf32, #tpu.memory_space<vmem>>, vector<8x1xf32>
    %100 = vector.broadcast %99 : vector<8x1xf32> to vector<8x256xf32>
    %101 = arith.mulf %98, %100 : vector<8x256xf32>
    %102 = arith.addf %97, %101 : vector<8x256xf32>
    %103 = arith.mulf %98, %14 : vector<8x256xf32>
    %c0_23 = arith.constant 0 : index
    %c1 = arith.constant 1 : index
    %104 = vector.load %arg2[%c0_23, %c1] : memref<8x20xf32, #tpu.memory_space<vmem>>, vector<8x1xf32>
    %105 = vector.broadcast %104 : vector<8x1xf32> to vector<8x256xf32>
    %106 = arith.mulf %103, %105 : vector<8x256xf32>
    %107 = arith.addf %102, %106 : vector<8x256xf32>
    %108 = arith.mulf %103, %14 : vector<8x256xf32>
    %c0_24 = arith.constant 0 : index
    %c0_25 = arith.constant 0 : index
    %109 = vector.load %arg2[%c0_24, %c0_25] : memref<8x20xf32, #tpu.memory_space<vmem>>, vector<8x1xf32>
    %110 = vector.broadcast %109 : vector<8x1xf32> to vector<8x256xf32>
    %111 = arith.mulf %108, %110 : vector<8x256xf32>
    %112 = arith.addf %107, %111 : vector<8x256xf32>
    %c0_26 = arith.constant 0 : index
    %c0_27 = arith.constant 0 : index
    %113 = vector.load %arg4[%c0_26, %c0_27] : memref<8x256xf32, #tpu.memory_space<vmem>>, vector<8x256xf32>
    tpu.vector_store %arg4[%c0_26, %c0_27], %112 {strides = array<i32>} : memref<8x256xf32, #tpu.memory_space<vmem>>, vector<8x256xf32>,
    return
  }
  func.func @transform_0(%arg0: i32, %arg1: i32) -> (i32, i32) {
    %c0_i32 = arith.constant 0 : i32
    %c0_i32_0 = arith.constant 0 : i32
    %c0_i32_1 = arith.constant 0 : i32
    return %c0_i32, %c0_i32_0 : i32, i32
  }
  func.func @transform_1(%arg0: i32, %arg1: i32) -> (i32, i32) {
    %c0_i32 = arith.constant 0 : i32
    return %arg0, %arg1 : i32, i32
  }
  func.func @transform_2(%arg0: i32, %arg1: i32) -> (i32, i32) {
    %c0_i32 = arith.constant 0 : i32
    return %arg0, %arg1 : i32, i32
  }
}

</mosaic_0001>

<bundles_post_ra>
// kernel: tpu_custom_call.1
= control target key start
LH: loop header
LB: loop body
LE: loop exit
PB: predicated region body
PF: predicated region fallthrough
CT: control target
= control target key end

     0   :  { %7 = vsyncpa [#allocation3], 0  ;;  %s523_s0 = inlined_call_operand.hbm [shape: f32[8,20], index: 0, kind: input, shape index: {}]   ;;  %s524_s1 = inlined_call_operand.hbm [shape: f32[8,256], index: 1, kind: input, shape index: {}]   ;;  %s525_s2 = inlined_call_operand.hbm [shape: f32[8,256], index: 2, kind: output, shape index: {}]  }
   0x1   :  { %8 = vsyncpa [#allocation6], 0 }
   0x2   :  { %9 = vsyncpa [#allocation4], 0  ;;  %s15_s11 = sshll.u32 %s523_s0, 4  ;;  %s420_s12 = smov [#allocation2]   ;;  %s16_s11 = int_to_ptr.hbm [resolvable:$true] %s15_s11 }
   0x3   :  { %s17_s13 = sshll.u32 %s420_s12, 4  ;;  %s26_s16 = sshll.u32 %s524_s1, 4  ;;  %s18_s13 = int_to_ptr.vmem [resolvable:$true] %s17_s13  ;;  %s27_s16 = int_to_ptr.hbm [resolvable:$true] %s26_s16 }
   0x4   :  { %20 = dma.hbm_to_vmem [thread:$0]  %s16_s11, 128, %s18_s13, [#allocation3]  }
   0x5   :  { %s421_s17 = smov [#allocation5]  }
   0x6   :  { %s28_s18 = sshll.u32 %s421_s17, 4  ;;  %s29_s18 = int_to_ptr.vmem [resolvable:$true] %s28_s18 }
   0x7   :  { %31 = dma.hbm_to_vmem [thread:$0]  %s27_s16, 256, %s29_s18, [#allocation6]  }
   0x8   :  { %414 = dma.done.wait [#allocation3], 128  }
   0x9   :  { %415 = vsyncadd [#allocation3], 4294967168 }
   0xa   :  { %416 = dma.done.wait [#allocation6], 256  }
   0xb   :  { %417 = vsyncadd [#allocation6], 4294967040  ;;  %v422_v0 = vmov 12   ;;  %v423_v1 = vmov 10   ;;  %v424_v2 = vmov 14   ;;  %v66_v3 = vld [vmem:[#allocation2] sm:$0xff] }
   0xc   :  { %311 = vset.pattern.permute.xlu1 %v422_v0  ;;  %309 = vset.pattern.permute.xlu0 %v423_v1  ;;  %v425_v4 = vmov 13   ;;  %v426_v5 = vmov 11   ;;  %v427_v6 = vmov 15   ;;  %v428_v7 = vmov 16   ;;  %v40_v21 = vld [vmem:[#allocation5] sm:$0xff]  ;;  %v41_v22 = vld [vmem:[#allocation5 + $0x8] sm:$0xff] }
   0xd   :  { %313 = vset.pattern.permute.xlu2 %v424_v2  ;;  %87 = vperm.xlu1 %311, %v66_v3   ;;  %v429_v8 = vmov 18   ;;  %v430_v9 = vmov 17   ;;  %v431_v10 = vmov 19   ;;  %v432_v11 = vmov 6   ;;  %s442_s0 = smov [#allocation7]   ;;  %s273_s21 = sshll.u32 %s525_s2, 4  ;;  %s274_s21 = int_to_ptr.hbm [resolvable:$true] %s273_s21 }
   0xe   :  { %69 = vperm.xlu0 %309, %v66_v3   ;;  %107 = vperm.xlu2 %313, %v66_v3   ;;  %v433_v12 = vmov 9   ;;  %v434_v13 = vmov 8   ;;  %v435_v14 = vmov 1   ;;  %v436_v15 = vmov 7   ;;  %s271_s1 = sshll.u32 %s442_s0, 4  ;;  %s272_s1 = int_to_ptr.vmem [resolvable:$true] %s271_s1 }
   0xf   :  { %v437_v16 = vmov 5   ;;  %v438_v17 = vmov 0   ;;  %v439_v18 = vmov 4   ;;  %v440_v19 = vmov 3  }
  0x10   :  { %v441_v20 = vmov 2   ;;  %v42_v23 = vmul.f32 0.8396892, %v40_v21  ;;  %v43_v24 = vmul.f32 0.8396892, %v41_v22 }
  0x12   :  { %v284_v25 = vadd.f32 -0.17677668, %v42_v23  ;;  %v285_v26 = vadd.f32 -0.17677668, %v43_v24 }
  0x14   :  { %v46_v27 = vmul.f32 %v284_v25, %v284_v25  ;;  %v47_v28 = vmul.f32 %v285_v26, %v285_v26  ;;  %v54_v31 = vmul.f32 0.70710665, %v284_v25  ;;  %v55_v32 = vmul.f32 0.70710665, %v285_v26 }
  0x15   :  { %312 = vset.pattern.permute.xlu1 %v425_v4  ;;  %v60_v57 = vmul.f32 -0.70710665, %v284_v25  ;;  %v61_v58 = vmul.f32 -0.70710665, %v285_v26 }
  0x16   :  { %310 = vset.pattern.permute.xlu0 %v426_v5  ;;  %97 = vperm.xlu1 %312, %v66_v3   ;;  %v48_v29 = vsub.f32 0.0, %v46_v27  ;;  %v49_v30 = vsub.f32 0.0, %v47_v28  ;;  %v56_v35 = vmul.f32 1.442695, %v54_v31  ;;  %v58_v36 = vmul.f32 1.442695, %v55_v32 }
  0x17   :  { %77 = vperm.xlu0 %310, %v66_v3   ;;  %314 = vset.pattern.permute.xlu2 %v427_v6 }
  0x18   :  { %117 = vperm.xlu2 %314, %v66_v3   ;;  %v50_v33 = vmul.f32 1.442695, %v48_v29  ;;  %v52_v34 = vmul.f32 1.442695, %v49_v30 }
  0x1a   :  { %330 = vpow2.f32 %v50_v33 }
  0x1b   :  { %332 = vpow2.f32 %v52_v34 }
  0x1c   :  { %334 = vpow2.f32 %v56_v35 }
  0x1d   :  { %336 = vpow2.f32 %v58_v36 }
  0x1e   :  { %315 = vset.pattern.permute.xlu1 %v428_v7 }
  0x1f   :  { %317 = vset.pattern.permute.xlu0 %v429_v8  ;;  %127 = vperm.xlu1 %315, %v66_v3   ;;  %v62_v8 = vmul.f32 1.442695, %v60_v57 }
  0x20   :  { %147 = vperm.xlu0 %317, %v66_v3   ;;  %316 = vset.pattern.permute.xlu2 %v430_v9  ;;  %v464_v37 = vpop.eup %330  ;;  %v64_v9 = vmul.f32 1.442695, %v61_v58 }
  0x21   :  { %137 = vperm.xlu2 %316, %v66_v3   ;;  %v466_v39 = vpop.eup %332  ;;  %338 = vpow2.f32 %v62_v8 }
  0x22   :  { %v468_v40 = vpop.eup %334  ;;  %340 = vpow2.f32 %v64_v9 }
  0x23   :  { %v470_v41 = vpop.eup %336  ;;  %v74_v42 = vmul.f32 %v468_v40, %v464_v37 }
  0x24   :  { %v75_v43 = vmul.f32 %v470_v41, %v466_v39 }
  0x25   :  { %v84_v46 = vmul.f32 %v468_v40, %v74_v42 }
  0x26   :  { %v85_v47 = vmul.f32 %v470_v41, %v75_v43 }
  0x27   :  { %318 = vset.pattern.permute.xlu1 %v431_v10  ;;  %v94_v49 = vmul.f32 %v468_v40, %v84_v46  ;;  %v492_v30 = vpop.eup %338 }
  0x28   :  { %322 = vset.pattern.permute.xlu0 %v432_v11  ;;  %157 = vperm.xlu1 %318, %v66_v3   ;;  %v95_v50 = vmul.f32 %v470_v41, %v85_v47  ;;  %v494_v35 = vpop.eup %340 }
  0x29   :  { %197 = vperm.xlu0 %322, %v66_v3   ;;  %319 = vset.pattern.permute.xlu2 %v433_v12  ;;  %v104_v59 = vmul.f32 %v468_v40, %v94_v49 }
  0x2a   :  { %167 = vperm.xlu2 %319, %v66_v3   ;;  %v105_v60 = vmul.f32 %v470_v41, %v95_v50 }
  0x2b   :  { %v114_v1 = vmul.f32 %v468_v40, %v104_v59 }
  0x2c   :  { %v115_v2 = vmul.f32 %v470_v41, %v105_v60 }
  0x30   :  { %320 = vset.pattern.permute.xlu1 %v434_v13 }
  0x31   :  { %327 = vset.pattern.permute.xlu0 %v435_v14  ;;  %177 = vperm.xlu1 %320, %v66_v3   ;;  %v124_v14 = vmul.f32 %v468_v40, %v114_v1 }
  0x32   :  { %247 = vperm.xlu0 %327, %v66_v3   ;;  %321 = vset.pattern.permute.xlu2 %v436_v15  ;;  %v125_v15 = vmul.f32 %v470_v41, %v115_v2 }
  0x33   :  { %187 = vperm.xlu2 %321, %v66_v3   ;;  %v134_v21 = vmul.f32 %v468_v40, %v124_v14 }
  0x34   :  { %v135_v22 = vmul.f32 %v470_v41, %v125_v15 }
  0x35   :  { %v144_v28 = vmul.f32 %v468_v40, %v134_v21 }
  0x36   :  { %v145_v29 = vmul.f32 %v470_v41, %v135_v22 }
  0x39   :  { %323 = vset.pattern.permute.xlu1 %v437_v16 }
  0x3a   :  { %329 = vset.pattern.permute.xlu0 %v438_v17  ;;  %207 = vperm.xlu1 %323, %v66_v3  }
  0x3b   :  { %324 = vset.pattern.permute.xlu2 %v439_v18 }
  0x3c   :  { %217 = vperm.xlu2 %324, %v66_v3  }
  0x42   :  { %325 = vset.pattern.permute.xlu1 %v440_v19 }
  0x43   :  { %227 = vperm.xlu1 %325, %v66_v3  }
  0x44   :  { %326 = vset.pattern.permute.xlu2 %v441_v20 }
  0x45   :  { %237 = vperm.xlu2 %326, %v66_v3  }
  0x4b   :  { %328 = vset.pattern.permute.xlu1 %v438_v17 }
  0x4c   :  { %257 = vperm.xlu1 %328, %v66_v3  }
  0x68   :  { %v108_v38 = vpop.permute.xlu2 %107 }
  0x69   :  { %v110_v10 = vmul.f32 %v108_v38, %v104_v59  ;;  %v111_v11 = vmul.f32 %v108_v38, %v105_v60 }
  0x72   :  { %v118_v48 = vpop.permute.xlu2 %117 }
  0x73   :  { %v120_v19 = vmul.f32 %v118_v48, %v114_v1  ;;  %v121_v20 = vmul.f32 %v118_v48, %v115_v2  ;;  %v164_v48 = vmul.f32 %v492_v30, %v464_v37 }
  0x7b   :  { %v138_v3 = vpop.permute.xlu2 %137 }
  0x7c   :  { %v140_v33 = vmul.f32 %v138_v3, %v134_v21  ;;  %v141_v34 = vmul.f32 %v138_v3, %v135_v22 }
  0x7f   :  { %v88_v44 = vpop.permute.xlu1 %87 }
  0x80   :  { %v70_v45 = vpop.permute.xlu0 %69  ;;  %v90_v61 = vmul.f32 %v88_v44, %v84_v46  ;;  %v91_v62 = vmul.f32 %v88_v44, %v85_v47 }
  0x81   :  { %v72_v51 = vmul.f32 %v464_v37, %v70_v45  ;;  %v73_v52 = vmul.f32 %v466_v39, %v70_v45 }
  0x84   :  { %v168_v27 = vpop.permute.xlu2 %167 }
  0x85   :  { %v170_v57 = vmul.f32 %v168_v27, %v164_v48 }
  0x88   :  { %v98_v53 = vpop.permute.xlu1 %97 }
  0x89   :  { %v78_v54 = vpop.permute.xlu0 %77  ;;  %v100_v4 = vmul.f32 %v98_v53, %v94_v49  ;;  %v101_v5 = vmul.f32 %v98_v53, %v95_v50  ;;  %v165_v49 = vmul.f32 %v494_v35, %v466_v39 }
  0x8a   :  { %v80_v55 = vmul.f32 %v78_v54, %v74_v42  ;;  %v81_v56 = vmul.f32 %v78_v54, %v75_v43  ;;  %v154_v42 = vmul.f32 %v468_v40, %v144_v28  ;;  %v155_v43 = vmul.f32 %v470_v41, %v145_v29 }
  0x8b   :  { %v175_v53 = vmul.f32 %v494_v35, %v165_v49  ;;  %v171_v58 = vmul.f32 %v168_v27, %v165_v49 }
  0x8c   :  { %v82_v63 = vadd.f32 %v80_v55, %v72_v51  ;;  %v83_v0 = vadd.f32 %v81_v56, %v73_v52  ;;  %v174_v52 = vmul.f32 %v492_v30, %v164_v48 }
  0x8d   :  { %v188_v55 = vpop.permute.xlu2 %187  ;;  %v185_v37 = vmul.f32 %v494_v35, %v175_v53 }
  0x8e   :  { %v92_v6 = vadd.f32 %v90_v61, %v82_v63  ;;  %v93_v7 = vadd.f32 %v91_v62, %v83_v0  ;;  %v184_v60 = vmul.f32 %v492_v30, %v174_v52 }
  0x8f   :  { %v195_v1 = vmul.f32 %v494_v35, %v185_v37 }
  0x90   :  { %v102_v12 = vadd.f32 %v100_v4, %v92_v6  ;;  %v103_v13 = vadd.f32 %v101_v5, %v93_v7  ;;  %v194_v0 = vmul.f32 %v492_v30, %v184_v60  ;;  %v190_v4 = vmul.f32 %v188_v55, %v184_v60 }
  0x91   :  { %v128_v18 = vpop.permute.xlu1 %127  ;;  %v191_v5 = vmul.f32 %v188_v55, %v185_v37  ;;  %v205_v8 = vmul.f32 %v494_v35, %v195_v1 }
  0x92   :  { %v112_v16 = vadd.f32 %v110_v10, %v102_v12  ;;  %v113_v17 = vadd.f32 %v111_v11, %v103_v13  ;;  %v130_v25 = vmul.f32 %v128_v18, %v124_v14  ;;  %v131_v26 = vmul.f32 %v128_v18, %v125_v15  ;;  %v148_v36 = vpop.permute.xlu0 %147 }
  0x93   :  { %v150_v46 = vmul.f32 %v148_v36, %v144_v28  ;;  %v151_v47 = vmul.f32 %v148_v36, %v145_v29  ;;  %v204_v7 = vmul.f32 %v492_v30, %v194_v0 }
  0x94   :  { %v122_v23 = vadd.f32 %v120_v19, %v112_v16  ;;  %v123_v24 = vadd.f32 %v121_v20, %v113_v17  ;;  %v215_v16 = vmul.f32 %v494_v35, %v205_v8 }
  0x95   :  { %v214_v15 = vmul.f32 %v492_v30, %v204_v7 }
  0x96   :  { %v132_v31 = vadd.f32 %v130_v25, %v122_v23  ;;  %v133_v32 = vadd.f32 %v131_v26, %v123_v24  ;;  %v218_v9 = vpop.permute.xlu2 %217  ;;  %v225_v20 = vmul.f32 %v494_v35, %v215_v16 }
  0x97   :  { %v224_v19 = vmul.f32 %v492_v30, %v214_v15  ;;  %v220_v25 = vmul.f32 %v218_v9, %v214_v15  ;;  %v221_v26 = vmul.f32 %v218_v9, %v215_v16 }
  0x98   :  { %v142_v44 = vadd.f32 %v140_v33, %v132_v31  ;;  %v143_v45 = vadd.f32 %v141_v34, %v133_v32  ;;  %v235_v28 = vmul.f32 %v494_v35, %v225_v20 }
  0x99   :  { %v234_v27 = vmul.f32 %v492_v30, %v224_v19 }
  0x9a   :  { %v158_v38 = vpop.permute.xlu1 %157  ;;  %v152_v54 = vadd.f32 %v150_v46, %v142_v44  ;;  %v153_v40 = vadd.f32 %v151_v47, %v143_v45  ;;  %v245_v44 = vmul.f32 %v494_v35, %v235_v28 }
  0x9b   :  { %v160_v50 = vmul.f32 %v158_v38, %v154_v42  ;;  %v161_v51 = vmul.f32 %v158_v38, %v155_v43  ;;  %v198_v6 = vpop.permute.xlu0 %197  ;;  %v244_v43 = vmul.f32 %v492_v30, %v234_v27 }
  0x9c   :  { %v200_v12 = vmul.f32 %v198_v6, %v194_v0  ;;  %v201_v13 = vmul.f32 %v198_v6, %v195_v1  ;;  %v255_v49 = vmul.f32 %v494_v35, %v245_v44 }
  0x9d   :  { %v162_v41 = vadd.f32 %v160_v50, %v152_v54  ;;  %v163_v56 = vadd.f32 %v161_v51, %v153_v40  ;;  %v254_v48 = vmul.f32 %v492_v30, %v244_v43 }
  0x9f   :  { %v172_v62 = vadd.f32 %v170_v57, %v162_v41  ;;  %v173_v63 = vadd.f32 %v171_v58, %v163_v56  ;;  %v238_v29 = vpop.permute.xlu2 %237 }
  0xa0   :  { %v240_v38 = vmul.f32 %v238_v29, %v234_v27  ;;  %v241_v42 = vmul.f32 %v238_v29, %v235_v28 }
  0xa3   :  { %v178_v59 = vpop.permute.xlu1 %177 }
  0xa4   :  { %v180_v61 = vmul.f32 %v178_v59, %v174_v52  ;;  %v181_v39 = vmul.f32 %v178_v59, %v175_v53  ;;  %v248_v47 = vpop.permute.xlu0 %247 }
  0xa5   :  { %v250_v52 = vmul.f32 %v248_v47, %v244_v43  ;;  %v251_v53 = vmul.f32 %v248_v47, %v245_v44 }
  0xa6   :  { %v182_v2 = vadd.f32 %v180_v61, %v172_v62  ;;  %v183_v3 = vadd.f32 %v181_v39, %v173_v63 }
  0xa8   :  { %v192_v10 = vadd.f32 %v190_v4, %v182_v2  ;;  %v193_v11 = vadd.f32 %v191_v5, %v183_v3 }
  0xaa   :  { %v202_v21 = vadd.f32 %v200_v12, %v192_v10  ;;  %v203_v22 = vadd.f32 %v201_v13, %v193_v11 }
  0xac   :  { %v208_v14 = vpop.permute.xlu1 %207 }
  0xad   :  { %v210_v17 = vmul.f32 %v208_v14, %v204_v7  ;;  %v211_v18 = vmul.f32 %v208_v14, %v205_v8 }
  0xaf   :  { %v212_v23 = vadd.f32 %v210_v17, %v202_v21  ;;  %v213_v24 = vadd.f32 %v211_v18, %v203_v22 }
  0xb1   :  { %v222_v32 = vadd.f32 %v220_v25, %v212_v23  ;;  %v223_v33 = vadd.f32 %v221_v26, %v213_v24 }
  0xb5   :  { %v228_v31 = vpop.permute.xlu1 %227 }
  0xb6   :  { %v230_v34 = vmul.f32 %v228_v31, %v224_v19  ;;  %v231_v36 = vmul.f32 %v228_v31, %v225_v20 }
  0xb8   :  { %v232_v45 = vadd.f32 %v230_v34, %v222_v32  ;;  %v233_v46 = vadd.f32 %v231_v36, %v223_v33 }
  0xba   :  { %v242_v50 = vadd.f32 %v240_v38, %v232_v45  ;;  %v243_v51 = vadd.f32 %v241_v42, %v233_v46 }
  0xbc   :  { %v252_v40 = vadd.f32 %v250_v52, %v242_v50  ;;  %v253_v55 = vadd.f32 %v251_v53, %v243_v51 }
  0xbe   :  { %v258_v54 = vpop.permute.xlu1 %257 }
  0xbf   :  { %v260_v41 = vmul.f32 %v258_v54, %v254_v48  ;;  %v261_v56 = vmul.f32 %v258_v54, %v255_v49 }
  0xc1   :  { %v262_v57 = vadd.f32 %v260_v41, %v252_v40  ;;  %v263_v58 = vadd.f32 %v261_v56, %v253_v55 }
  0xc3   :  { %264 = vst [vmem:[#allocation7] sm:$0xff] %v262_v57 }
  0xc4   :  { %265 = vst [vmem:[#allocation7 + $0x8] sm:$0xff] %v263_v58 }
  0xc5   :  { %276 = dma.vmem_to_hbm [thread:$0]  %s272_s1, 256, %s274_s21, [#allocation4]  }
  0xc6   :  { %418 = dma.done.wait [#allocation4], 256  }
  0xc7   :  { %419 = vsyncadd [#allocation4], 4294967040 }
  0xc8   :  { %281 = vsyncpa [#allocation3], 1 }
  0xc9   :  { %282 = vsyncpa [#allocation6], 1 }
  0xca   :  { %283 = vsyncpa [#allocation4], 1 }

</bundles_post_ra>
